<compile_context>
chip_gen: v6e
topology: v6e:2x2x1
jax: 0.10.0
libtpu: 0.0.40
codegen_flags: <defaults>
</compile_context>

<pallas_src>
import functools

import jax
import jax.numpy as jnp
from jax.experimental import pallas as pl
from jax.experimental.pallas import tpu as pltpu

_MIB = 1024 * 1024


def _tpu_vmem_capacity_bytes(default=64 * _MIB):
    """Physical VMEM per TensorCore; conservative 64 MiB (v7x) fallback."""
    try:
        info = pltpu.get_tpu_info()
        v = getattr(info, "vmem_capacity_bytes", None)
        if v:
            return int(v)
    except Exception:
        pass
    return default


def _num_tensorcores(default=1):
    """TensorCores per chip; defaults to 1 (v5e/v6e) when undetectable."""
    try:
        info = pltpu.get_tpu_info()
        for attr in ("num_cores", "core_count", "num_tensorcores"):
            v = getattr(info, attr, None)
            if v is not None:
                v = int(v)
                if v > 0:
                    return v
    except Exception:
        pass
    return default


def _contrastive_loss_kernel(o1_ref, o2_ref, lbl_ref, out_ref, *,
                             margin, eps, batch, tb, tiles_per_core,
                             total_tiles, split):
    if split:
        tile = pl.program_id(0) * tiles_per_core + pl.program_id(1)
    else:
        tile = pl.program_id(0)

    # Upcast in-kernel (not in the wrapper) so sub-f32 inputs keep HBM traffic low.
    o1 = o1_ref[...].astype(jnp.float32)
    o2 = o2_ref[...].astype(jnp.float32)

    # torch.nn.functional.pairwise_distance(x1, x2, p=2, eps=1e-6):
    #   d = || x1 - x2 + eps ||_2 along the feature dim.
    diff = o1 - o2 + eps                                   # (tb, D) f32
    sq_sum = jnp.sum(diff * diff, axis=1, keepdims=True)   # (tb, 1)  lane reduce
    d = jnp.sqrt(sq_sum)                                   # (tb, 1)

    # Label is resident (fetched once into VMEM); slice this tile's rows.
    if total_tiles == 1:
        lbl = lbl_ref[...].astype(jnp.float32)             # (tb, 1)
    else:
        start = pl.multiple_of(tile * tb, 8)               # tb % 8 == 0 when tiled
        lbl = lbl_ref[pl.ds(start, tb), :].astype(jnp.float32)

    hinge = jnp.maximum(margin - d, 0.0)
    # Positive term uses sq_sum directly (avoids the sqrt -> square round trip).
    per_example = lbl * sq_sum + (1.0 - lbl) * (hinge * hinge)

    # Zero rows past the true batch (padded last tile / clamped duplicate tiles).
    row = tile * tb + jax.lax.broadcasted_iota(jnp.int32, (tb, 1), 0)
    out_ref[...] = jnp.where(row < batch, per_example, 0.0)


def contrastive_loss(output1, output2, label, margin=1.0, eps=1e-6,
                     block_rows=None):
    """output1, output2: (B, D); label: (B,). Returns scalar f32 loss."""
    B, D = output1.shape
    itemsize = jnp.dtype(output1.dtype).itemsize

    # --- VMEM budget (chip aware) -------------------------------------------
    vmem_cap = _tpu_vmem_capacity_bytes()            # 128 MiB v5e/v6e, 64 MiB v7x
    vmem_limit = max(32 * _MIB, min(3 * vmem_cap // 4, 100 * _MIB))
    label_bytes = 8 * B + 4096                       # resident label (2 buffers)
    working_budget = max(vmem_limit - 8 * _MIB - label_bytes, 4 * _MIB)
    # Per batch-row cost: 2 inputs x 2 pipeline buffers x itemsize, plus ~4 live
    # f32 (tb, D) intermediates (o1/o2 upcast, diff, diff^2) inside the kernel.
    bytes_per_row = D * (2 * 2 * itemsize + 4 * 4)
    sub = max(8, 32 // itemsize)                     # 8 f32 / 16 bf16 / 32 int8-fp8

    tb = working_budget // bytes_per_row if block_rows is None else int(block_rows)
    if tb >= B:
        tb = B                                       # single tile: full-dim block
    else:
        tb = max(sub, (tb // sub) * sub)             # sublane-aligned, dtype aware
    # TODO(synk): for very wide embeddings (D so large that tb=sub overflows the
    # budget), add a trailing D grid axis with a (tb, 1) partial sq_sum scratch.

    n_tiles = pl.cdiv(B, tb)

    # --- core split: only when the chip really has >1 TensorCore (v7x) -------
    n_cores = _num_tensorcores()
    split = n_cores > 1 and n_tiles >= n_cores
    n_split = n_cores if split else 1
    tiles_per_core = pl.cdiv(n_tiles, n_split)
    total_tiles = n_split * tiles_per_core
    R = total_tiles * tb                             # padded output row count

    # Label: resident in VMEM, padded so every tile's slice is in bounds.
    label2d = label.reshape(B, 1)
    if R > B:
        label2d = jnp.pad(label2d, ((0, R - B), (0, 0)))

    kernel = functools.partial(
        _contrastive_loss_kernel,
        margin=float(margin), eps=float(eps), batch=B, tb=tb,
        tiles_per_core=tiles_per_core, total_tiles=total_tiles, split=split,
    )

    if split:
        grid = (n_split, tiles_per_core)

        def in_map(c, i):
            # Clamp so padded (c, i) combos never read past the last block; their
            # rows are masked to zero and land in their own padded output block.
            return (jnp.minimum(c * tiles_per_core + i, n_tiles - 1), 0)

        def lbl_map(c, i):
            return (0, 0)

        def out_map(c, i):
            return (c * tiles_per_core + i, 0)

        dims = (getattr(pltpu, "CORE_PARALLEL", "parallel"),
                getattr(pltpu, "ARBITRARY", "arbitrary"))
    else:
        grid = (n_tiles,)

        def in_map(i):
            return (i, 0)

        def lbl_map(i):
            return (0, 0)

        def out_map(i):
            return (i, 0)

        dims = ("parallel",)

    partials = pl.pallas_call(
        kernel,
        out_shape=jax.ShapeDtypeStruct((R, 1), jnp.float32),
        grid_spec=pltpu.PrefetchScalarGridSpec(
            num_scalar_prefetch=0,
            grid=grid,
            in_specs=[
                pl.BlockSpec((tb, D), in_map),
                pl.BlockSpec((tb, D), in_map),
                pl.BlockSpec((R, 1), lbl_map),      # resident: DMA'd once
            ],
            out_specs=pl.BlockSpec((tb, 1), out_map),
        ),
        compiler_params=pltpu.CompilerParams(
            dimension_semantics=dims,
            vmem_limit_bytes=vmem_limit,
        ),
        cost_estimate=pl.CostEstimate(
            flops=4 * B * D + 8 * B,
            transcendentals=B,
            bytes_accessed=2 * B * D * itemsize
            + R * jnp.dtype(label2d.dtype).itemsize + 4 * R,
        ),
    )(output1, output2, label2d)

    return jnp.sum(partials) / jnp.float32(B)


def contrastive_loss_ref(output1, output2, label, margin=1.0, eps=1e-6):
    o1 = output1.astype(jnp.float32)
    o2 = output2.astype(jnp.float32)
    d = jnp.sqrt(jnp.sum((o1 - o2 + eps) ** 2, axis=1))
    hinge = jnp.maximum(margin - d, 0.0)
    return jnp.mean(label * d**2 + (1.0 - label) * hinge**2)


if __name__ == "__main__":
    key = jax.random.PRNGKey(0)
    k1, k2, k3 = jax.random.split(key, 3)

    # Small shapes consistent with the module: B feature-row pairs of width D.
    B, D = 8, 32
    output1 = jax.random.normal(k1, (B, D), dtype=jnp.float32)
    output2 = jax.random.normal(k2, (B, D), dtype=jnp.float32)
    label = jax.random.bernoulli(k3, 0.5, (B,)).astype(jnp.float32)

    loss = jax.block_until_ready(contrastive_loss(output1, output2, label, margin=1.0))
    ref = contrastive_loss_ref(output1, output2, label, margin=1.0)
    assert jnp.allclose(loss, ref, rtol=1e-5, atol=1e-5), (loss, ref)

    # Also exercise the tiled + masked path (batch not a multiple of the tile).
    B2, D2 = 29, 32
    o1 = jax.random.normal(k1, (B2, D2), dtype=jnp.float32)
    o2 = jax.random.normal(k2, (B2, D2), dtype=jnp.float32)
    lb = jax.random.bernoulli(k3, 0.5, (B2,)).astype(jnp.float32)
    loss2 = jax.block_until_ready(
        contrastive_loss(o1, o2, lb, margin=1.0, block_rows=8))
    ref2 = contrastive_loss_ref(o1, o2, lb, margin=1.0)
    assert jnp.allclose(loss2, ref2, rtol=1e-5, atol=1e-5), (loss2, ref2)

    print("KERNEL_OK")
</pallas_src>

<mosaic_0001>
module attributes {stable_mosaic.version = 11 : i64} {
  func.func @_contrastive_loss_kernel(%arg0: i32, %arg1: memref<8x32xf32, #tpu.memory_space<vmem>>, %arg2: memref<8x32xf32, #tpu.memory_space<vmem>>, %arg3: memref<8x1xf32, #tpu.memory_space<vmem>>, %arg4: memref<8x1xf32, #tpu.memory_space<vmem>>) attributes {dimension_semantics = [#tpu.dimension_semantics<parallel>], iteration_bounds = array<i64: 1>, scalar_prefetch = 0 : i64, scratch_operands = 0 : i64, tpu.core_type = #tpu.core_type<tc>, window_params = [{transform_indices = @transform_0, window_bounds = array<i64: 8, 32>}, {transform_indices = @transform_1, window_bounds = array<i64: 8, 32>}, {pipeline_mode = #tpu.pipeline_mode<synchronous>, transform_indices = @transform_2, window_bounds = array<i64: 8, 1>}, {transform_indices = @transform_3, window_bounds = array<i64: 8, 1>}]} {
    %c0 = arith.constant 0 : index
    %c0_0 = arith.constant 0 : index
    %0 = vector.load %arg1[%c0, %c0_0] : memref<8x32xf32, #tpu.memory_space<vmem>>, vector<8x32xf32>
    %c0_1 = arith.constant 0 : index
    %c0_2 = arith.constant 0 : index
    %1 = vector.load %arg2[%c0_1, %c0_2] : memref<8x32xf32, #tpu.memory_space<vmem>>, vector<8x32xf32>
    %2 = arith.subf %0, %1 : vector<8x32xf32>
    %cst = arith.constant 9.99999997E-7 : f32
    %3 = vector.broadcast %cst : f32 to vector<8x32xf32>
    %4 = arith.addf %2, %3 : vector<8x32xf32>
    %5 = arith.mulf %4, %4 : vector<8x32xf32>
    %cst_3 = arith.constant dense<0.000000e+00> : vector<8xf32>
    %6 = vector.multi_reduction <add>, %5, %cst_3 [1] : vector<8x32xf32> to vector<8xf32>
    %7 = vector.shape_cast %6 : vector<8xf32> to vector<8x1xf32>
    %8 = math.sqrt %7 : vector<8x1xf32>
    %c0_4 = arith.constant 0 : index
    %c0_5 = arith.constant 0 : index
    %9 = vector.load %arg3[%c0_4, %c0_5] : memref<8x1xf32, #tpu.memory_space<vmem>>, vector<8x1xf32>
    %cst_6 = arith.constant 1.000000e+00 : f32
    %10 = vector.broadcast %cst_6 : f32 to vector<8x1xf32>
    %11 = arith.subf %10, %8 : vector<8x1xf32>
    %cst_7 = arith.constant 0.000000e+00 : f32
    %12 = vector.broadcast %cst_7 : f32 to vector<8x1xf32>
    %13 = arith.maximumf %11, %12 : vector<8x1xf32>
    %14 = arith.mulf %9, %7 : vector<8x1xf32>
    %cst_8 = arith.constant 1.000000e+00 : f32
    %15 = vector.broadcast %cst_8 : f32 to vector<8x1xf32>
    %16 = arith.subf %15, %9 : vector<8x1xf32>
    %17 = arith.mulf %13, %13 : vector<8x1xf32>
    %18 = arith.mulf %16, %17 : vector<8x1xf32>
    %19 = arith.addf %14, %18 : vector<8x1xf32>
    %c8_i32 = arith.constant 8 : i32
    %20 = arith.muli %arg0, %c8_i32 : i32
    %21 = tpu.iota {dimensions = array<i32: 0>} : vector<8x1xi32>
    %22 = vector.broadcast %20 : i32 to vector<8x1xi32>
    %23 = arith.addi %22, %21 : vector<8x1xi32>
    %c8_i32_9 = arith.constant 8 : i32
    %24 = vector.broadcast %c8_i32_9 : i32 to vector<8x1xi32>
    %25 = arith.cmpi slt, %23, %24 : vector<8x1xi32>
    %cst_10 = arith.constant 0.000000e+00 : f32
    %26 = vector.broadcast %cst_10 : f32 to vector<8x1xf32>
    %27 = arith.select %25, %19, %26 : vector<8x1xi1>, vector<8x1xf32>
    %c0_11 = arith.constant 0 : index
    %c0_12 = arith.constant 0 : index
    %28 = vector.load %arg4[%c0_11, %c0_12] : memref<8x1xf32, #tpu.memory_space<vmem>>, vector<8x1xf32>
    tpu.vector_store %arg4[%c0_11, %c0_12], %27 {strides = array<i32>} : memref<8x1xf32, #tpu.memory_space<vmem>>, vector<8x1xf32>,
    return
  }
  func.func @transform_0(%arg0: i32) -> (i32, i32) {
    %c0_i32 = arith.constant 0 : i32
    %c0_i32_0 = arith.constant 0 : i32
    return %arg0, %c0_i32 : i32, i32
  }
  func.func @transform_1(%arg0: i32) -> (i32, i32) {
    %c0_i32 = arith.constant 0 : i32
    %c0_i32_0 = arith.constant 0 : i32
    return %arg0, %c0_i32 : i32, i32
  }
  func.func @transform_2(%arg0: i32) -> (i32, i32) {
    %c0_i32 = arith.constant 0 : i32
    %c0_i32_0 = arith.constant 0 : i32
    %c0_i32_1 = arith.constant 0 : i32
    return %c0_i32, %c0_i32_0 : i32, i32
  }
  func.func @transform_3(%arg0: i32) -> (i32, i32) {
    %c0_i32 = arith.constant 0 : i32
    %c0_i32_0 = arith.constant 0 : i32
    return %arg0, %c0_i32 : i32, i32
  }
}

</mosaic_0001>

<bundles_post_ra>
// kernel: tpu_custom_call.1
= control target key start
LH: loop header
LB: loop body
LE: loop exit
PB: predicated region body
PF: predicated region fallthrough
CT: control target
= control target key end

     0   :  { %8 = vsyncpa [#allocation3], 0  ;;  %s89_s12 = smov [#allocation2]   ;;  %s122_s0 = inlined_call_operand.vmem [shape: f32[8,32], index: 0, kind: input, shape index: {}]   ;;  %s123_s1 = inlined_call_operand.hbm [shape: f32[8,32], index: 1, kind: input, shape index: {}]   ;;  %s124_s2 = inlined_call_operand.vmem [shape: f32[8,1], index: 2, kind: input, shape index: {}]   ;;  %s125_s3 = inlined_call_operand.vmem [shape: f32[8,1], index: 3, kind: output, shape index: {}]  }
   0x1   :  { %s17_s13 = sshll.u32 %s89_s12, 4  ;;  %s18_s13 = int_to_ptr.vmem [resolvable:$true] %s17_s13 }
   0x2   :  { %s75_s14 = scalar_lea.vmem %s18_s13, 128  ;;  %p80_p1 = scmp.lt.s32.totalorder %s18_s13, %s18_s13 }
   0x3   :  { %p76_p0 = scmp.ne.s32.totalorder %s18_s13, %s75_s14  ;;  %p81_p2 = scmp.lt.s32.totalorder %s75_s14, %s75_s14 }
   0x5   :  { %p82_p3 = por %p81_p2, %p80_p1 }
   0x7   :  { %p83_p4 = pnand %p82_p3, %p76_p0 }
   0x9   :  { %86 = shalt.err (!%p83_p4)
}
   0xa   :  { %20 = dma.hbm_to_vmem [thread:$0]  %s123_s1, 128, %s18_s13, [#allocation3]  }
   0xb   :  { %87 = dma.done.wait [#allocation3], 128  }
   0xc   :  { %88 = vsyncadd [#allocation3], 4294967168  ;;  %v26_v0 = vld [vmem:[%s122_s0] sm:$0xff]  ;;  %vm31_vm0 = vcmask 261120   ;;  %vm57_vm3 = vcmask 7168  }
   0xd   :  { %v27_v1 = vld [vmem:[#allocation2] sm:$0xff] }
   0xe   :  { %v28_v2 = vsub.f32 %v26_v0, %v27_v1  ;;  %v42_v13 = vld [vmem:[%s124_s2] sm:$0xff] }
   0xf   :  { %v46_v15 = vsub.f32 1.0, %v42_v13 }
  0x10   :  { %v29_v3 = vadd.f32 1e-06, %v28_v2 }
  0x12   :  { %v30_v4 = vmul.f32 %v29_v3, %v29_v3 }
  0x14   :  { %v32_v5 = vsel %vm31_vm0, %v30_v4, 0.0 }
  0x15   :  { %33 = vadd.xlane.f32.xlu0 %v32_v5 }
  0x9e   :  { %v34_v6 = vpop.xlane.xlu0 %33 }
  0x9f   :  { %65 = vrsqrt.f32 %v34_v6  ;;  %vm37_vm1 = vcmp.eq.f32.partialorder %v34_v6, inf  ;;  %v40_v9 = vand.u32 2147483648, %v34_v6  ;;  %vm39_vm2 = vcmp.eq.f32.partialorder %v34_v6, 0.0 }
  0xa0   :  { %v45_v17 = vmul.f32 %v42_v13, %v34_v6 }
  0xac   :  { %v66_v7 = vpop.eup %65 }
  0xad   :  { %v36_v8 = vmul.f32 %v66_v7, %v34_v6 }
  0xaf   :  { %v38_v10 = vsel %vm37_vm1, %v34_v6, %v36_v8 }
  0xb0   :  { %v41_v11 = vsel %vm39_vm2, %v40_v9, %v38_v10 }
  0xb1   :  { %v43_v12 = vsub.f32 1.0, %v41_v11 }
  0xb3   :  { %v44_v14 = vmax.f32 %v43_v12, 0.0 }
  0xb5   :  { %v47_v16 = vmul.f32 %v44_v14, %v44_v14 }
  0xb7   :  { %v48_v18 = vmul.f32 %v47_v16, %v46_v15 }
  0xb9   :  { %v49_v19 = vadd.f32 %v48_v18, %v45_v17 }
  0xbb   :  { %58 = vst.msk [vmem:[%s125_s3] sm:$0xff] %vm57_vm3, %v49_v19 }
  0xbc   :  { %63 = vsyncpa [#allocation3], 1 }

</bundles_post_ra>
